<compile_context>
chip_gen: v6e
topology: v6e:2x2x1
jax: 0.10.0
libtpu: 0.0.40
codegen_flags: <defaults>
</compile_context>

<pallas_src>
import functools

import jax
import jax.numpy as jnp
from jax import lax
from jax.experimental import pallas as pl
from jax.experimental.pallas import tpu as pltpu


# --------------------------------------------------------------------------
# Kernels
# --------------------------------------------------------------------------
def _pcbm_fused_kernel(emb_ref, w_ref, b_ref, out_ref):
    """Inference path: out = emb @ W_comb + b_eff (single MXU matmul)."""
    logits = jnp.dot(emb_ref[...], w_ref[...],
                     preferred_element_type=jnp.float32)      # [tb, K_pad] f32
    out_ref[...] = (logits + b_ref[...]).astype(out_ref.dtype)


def _pcbm_dist_kernel(emb_ref, cavs_ref, scale_ref, shift_ref, wt_ref, b_ref,
                      out_ref, dist_ref):
    """Analysis path: also materializes dist = (emb @ cavs.T + i) / n."""
    # margins[b, c] = sum_d emb[b, d] * cavs[c, d]  -> contract shared last
    # axis directly on the MXU, no materialized transpose.
    margins = lax.dot_general(
        emb_ref[...], cavs_ref[...],
        dimension_numbers=(((1,), (1,)), ((), ())),
        preferred_element_type=jnp.float32)                   # [tb, C_pad] f32

    # (margins + intercept) / norm == margins * (1/norm) + intercept/norm
    dist = margins * scale_ref[...] + shift_ref[...]           # f32 epilogue
    dist_ref[...] = dist.astype(dist_ref.dtype)

    # classifier: dist @ W_cls.T == dist @ wt (wt pre-transposed [C_pad, K_pad])
    logits = jnp.dot(dist.astype(wt_ref.dtype), wt_ref[...],
                     preferred_element_type=jnp.float32)       # [tb, K_pad] f32
    out_ref[...] = (logits + b_ref[...]).astype(out_ref.dtype)


# --------------------------------------------------------------------------
# Helpers
# --------------------------------------------------------------------------
def _round_up(x, m):
    return ((x + m - 1) // m) * m


def _sublane(dtype):
    # native sublane multiple: 8 (f32), 16 (bf16), 32 (int8/fp8)
    return max(8, 32 // jnp.dtype(dtype).itemsize)


def _vmem_limit_bytes(block_bytes):
    # double-buffered pipeline blocks + headroom; clamped so it is safe on
    # v5e/v6e (128 MiB physical) and v7x (64 MiB physical).
    est = 2 * int(block_bytes) + (4 << 20)
    return int(min(max(est, 32 << 20), 64 << 20))


# --------------------------------------------------------------------------
# One-time weight preprocessing (hoisted out of the forward hot path)
# --------------------------------------------------------------------------
def prepare_pcbm_params(cavs, intercepts, norms, w_cls, b_cls,
                        compute_dtype=None):
    """Preprocess concept bank + classifier once; reuse across forward calls.

    Returns (params, meta):
      params: dict of device arrays consumed by pcbm_forward.
      meta:   {"n_concepts": C, "n_classes": K} static python ints.

    compute_dtype: optional matmul dtype (e.g. jnp.bfloat16 on v6e/v7x for 2x
      bandwidth / full-rate MXU). Accumulation & epilogue are always f32.
      NOTE: bf16 compute deviates from the f32 reference at ~1e-2 level.
    """
    cavs = jnp.asarray(cavs)
    w_cls = jnp.asarray(w_cls)
    C, D = cavs.shape
    K = w_cls.shape[0]
    cdt = jnp.dtype(compute_dtype) if compute_dtype is not None else cavs.dtype
    f32 = jnp.float32
    C_pad = _round_up(C, 128)
    K_pad = _round_up(K, 128)

    cavs32 = cavs.astype(f32)                                  # [C, D]
    w32 = w_cls.astype(f32)                                    # [K, C]
    b32 = jnp.asarray(b_cls).reshape(K).astype(f32)            # [K]
    # 1/norm may be inf for zero norms -- matches the reference's behavior.
    inv_norms = 1.0 / jnp.asarray(norms).reshape(C).astype(f32)
    shift = jnp.asarray(intercepts).reshape(C).astype(f32) * inv_norms

    # ---- return_dist=True path: lane-padded operands ----------------------
    # padded concept columns: scale=1, shift=0, zero cavs / W^T rows -> their
    # dist columns are exact zeros and contribute nothing to the logits.
    scale_row = jnp.ones((1, C_pad), f32).at[0, :C].set(inv_norms)
    shift_row = jnp.zeros((1, C_pad), f32).at[0, :C].set(shift)
    cavs_p = jnp.zeros((C_pad, D), cdt).at[:C, :].set(cavs.astype(cdt))
    wt = jnp.zeros((C_pad, K_pad), cdt).at[:C, :K].set(w32.T.astype(cdt))
    bias_row = jnp.zeros((1, K_pad), f32).at[0, :K].set(b32)

    # ---- return_dist=False path: fold into a single [D, K] matmul ---------
    #   out = emb @ W_comb + b_eff
    cavs_scaled = cavs32 * inv_norms[:, None]                  # [C, D]
    w_comb = jnp.matmul(cavs_scaled.T, w32.T,
                        precision=lax.Precision.HIGHEST)       # [D, K] f32
    b_eff = jnp.matmul(shift, w32.T,
                       precision=lax.Precision.HIGHEST) + b32  # [K]   f32
    w_comb_p = jnp.zeros((D, K_pad), cdt).at[:, :K].set(w_comb.astype(cdt))
    b_eff_row = jnp.zeros((1, K_pad), f32).at[0, :K].set(b_eff)

    params = dict(cavs=cavs_p, scale_row=scale_row, shift_row=shift_row,
                  wt=wt, bias_row=bias_row,
                  w_comb=w_comb_p, b_eff_row=b_eff_row)
    meta = dict(n_concepts=int(C), n_classes=int(K))
    return params, meta


# --------------------------------------------------------------------------
# Forward
# --------------------------------------------------------------------------
@functools.partial(jax.jit, static_argnames=("n_concepts", "n_classes",
                                              "return_dist", "tile_b"))
def pcbm_forward(emb, params, *, n_concepts, n_classes,
                 return_dist=False, tile_b=256):
    """Fused Pallas forward for PosthocLinearCBM.  emb: [B, D]."""
    B, D = emb.shape
    C, K = n_concepts, n_classes
    out_dtype = emb.dtype

    cdt = params["cavs"].dtype if return_dist else params["w_comb"].dtype
    emb_c = emb.astype(cdt)

    # ---- batch tiling: no batch padding; cap tile so grid has >= 2 steps ---
    sub = _sublane(cdt)
    tb = min(int(tile_b), _round_up(pl.cdiv(B, 2), sub))
    tb = max(sub, _round_up(tb, sub))
    if tb >= B:
        tb = B                       # single full-extent tile (always legal)
    grid = (pl.cdiv(B, tb),)

    cbytes = jnp.dtype(cdt).itemsize
    obytes = jnp.dtype(out_dtype).itemsize

    if not return_dist:
        # -------- folded inference path: one matmul, no dist HBM write ------
        w_comb, b_eff = params["w_comb"], params["b_eff_row"]
        K_pad = w_comb.shape[1]
        block_bytes = (tb * D * cbytes          # emb tile
                       + D * K_pad * cbytes     # folded weight (resident)
                       + K_pad * 4              # bias row
                       + tb * K_pad * obytes)   # out tile
        out_p = pl.pallas_call(
            _pcbm_fused_kernel,
            out_shape=jax.ShapeDtypeStruct((B, K_pad), out_dtype),
            grid=grid,
            in_specs=[
                pl.BlockSpec((tb, D), lambda i: (i, 0)),        # emb: batch-tiled
                pl.BlockSpec((D, K_pad), lambda i: (0, 0)),     # W_comb: resident
                pl.BlockSpec((1, K_pad), lambda i: (0, 0)),     # b_eff row
            ],
            out_specs=pl.BlockSpec((tb, K_pad), lambda i: (i, 0)),
            compiler_params=pltpu.CompilerParams(
                dimension_semantics=("parallel",),
                vmem_limit_bytes=_vmem_limit_bytes(block_bytes)),
        )(emb_c, w_comb, b_eff)
        return out_p if K == K_pad else out_p[:, :K]

    # -------- analysis path: also produce dist --------------------------
    cavs_p, scale_row, shift_row = (params["cavs"], params["scale_row"],
                                    params["shift_row"])
    wt, bias_row = params["wt"], params["bias_row"]
    C_pad = cavs_p.shape[0]
    K_pad = wt.shape[1]
    block_bytes = (tb * D * cbytes
                   + C_pad * D * cbytes + C_pad * K_pad * cbytes
                   + (2 * C_pad + K_pad) * 4
                   + tb * K_pad * obytes + tb * C_pad * obytes
                   + tb * C_pad * 4)            # f32 dist intermediate slack
    out_p, dist_p = pl.pallas_call(
        _pcbm_dist_kernel,
        out_shape=(jax.ShapeDtypeStruct((B, K_pad), out_dtype),
                   jax.ShapeDtypeStruct((B, C_pad), out_dtype)),
        grid=grid,
        in_specs=[
            pl.BlockSpec((tb, D), lambda i: (i, 0)),            # emb: batch-tiled
            pl.BlockSpec((C_pad, D), lambda i: (0, 0)),         # cavs: resident
            pl.BlockSpec((1, C_pad), lambda i: (0, 0)),         # 1/norm row
            pl.BlockSpec((1, C_pad), lambda i: (0, 0)),         # intercept/norm row
            pl.BlockSpec((C_pad, K_pad), lambda i: (0, 0)),     # W_cls^T: resident
            pl.BlockSpec((1, K_pad), lambda i: (0, 0)),         # bias row
        ],
        out_specs=(pl.BlockSpec((tb, K_pad), lambda i: (i, 0)),
                   pl.BlockSpec((tb, C_pad), lambda i: (i, 0))),
        compiler_params=pltpu.CompilerParams(
            dimension_semantics=("parallel",),
            vmem_limit_bytes=_vmem_limit_bytes(block_bytes)),
    )(emb_c, cavs_p, scale_row, shift_row, wt, bias_row)
    out = out_p if K == K_pad else out_p[:, :K]
    dist = dist_p if C == C_pad else dist_p[:, :C]
    return out, dist


def posthoc_linear_cbm_forward(emb, cavs, intercepts, norms, w_cls, b_cls,
                               return_dist=False, compute_dtype=None,
                               tile_b=256):
    """One-shot convenience wrapper (re-runs weight prep every call).
    For repeated inference, call prepare_pcbm_params() once and reuse."""
    params, meta = prepare_pcbm_params(cavs, intercepts, norms, w_cls, b_cls,
                                       compute_dtype=compute_dtype)
    return pcbm_forward(emb, params, n_concepts=meta["n_concepts"],
                        n_classes=meta["n_classes"],
                        return_dist=return_dist, tile_b=tile_b)


# --------------------------------------------------------------------------
# Pure-JAX reference + self-test
# --------------------------------------------------------------------------
def _reference(emb, cavs, intercepts, norms, w_cls, b_cls):
    margins = (cavs @ emb.T + intercepts) / norms        # [C, B]
    dist = margins.T                                      # [B, C]
    out = dist @ w_cls.T + b_cls                          # [B, K]
    return out, dist


if __name__ == "__main__":
    key = jax.random.PRNGKey(0)
    k1, k2, k3, k4, k5, k6 = jax.random.split(key, 6)

    # Small shapes consistent with the module: batch=8, embedding dim=32,
    # n_concepts=16, n_classes=5.
    B, D, C, K = 8, 32, 16, 5

    emb = jax.random.normal(k1, (B, D), dtype=jnp.float32)
    cavs = jax.random.normal(k2, (C, D), dtype=jnp.float32)
    intercepts = jax.random.normal(k3, (C, 1), dtype=jnp.float32) * 0.1
    norms = jnp.abs(jax.random.normal(k4, (C, 1), dtype=jnp.float32)) + 0.5
    w_cls = jax.random.normal(k5, (K, C), dtype=jnp.float32) * 0.1
    b_cls = jax.random.normal(k6, (K,), dtype=jnp.float32) * 0.1

    # One-time weight preprocessing (hoisted out of the hot path).
    params, meta = prepare_pcbm_params(cavs, intercepts, norms, w_cls, b_cls)

    # Inference path: folded single-matmul kernel, no dist written to HBM.
    out_fast = pcbm_forward(emb, params, n_concepts=meta["n_concepts"],
                            n_classes=meta["n_classes"], return_dist=False)
    # Analysis path: dist is computed and returned.
    out, dist = pcbm_forward(emb, params, n_concepts=meta["n_concepts"],
                             n_classes=meta["n_classes"], return_dist=True)
    out_fast, out, dist = jax.block_until_ready((out_fast, out, dist))

    ref_out, ref_dist = _reference(emb, cavs, intercepts, norms, w_cls, b_cls)
    assert out_fast.shape == (B, K) and out.shape == (B, K)
    assert dist.shape == (B, C)
    assert jnp.allclose(dist, ref_dist, atol=2e-4, rtol=2e-4), "dist mismatch"
    assert jnp.allclose(out, ref_out, atol=2e-4, rtol=2e-4), \
        "logits mismatch (dist path)"
    assert jnp.allclose(out_fast, ref_out, atol=2e-4, rtol=2e-4), \
        "logits mismatch (folded path)"

    print("KERNEL_OK")
</pallas_src>

<mosaic_0001>
module attributes {stable_mosaic.version = 11 : i64} {
  func.func @_pcbm_fused_kernel(%arg0: i32, %arg1: memref<8x32xf32, #tpu.memory_space<vmem>>, %arg2: memref<32x128xf32, #tpu.memory_space<vmem>>, %arg3: memref<1x128xf32, #tpu.memory_space<vmem>>, %arg4: memref<8x128xf32, #tpu.memory_space<vmem>>) attributes {dimension_semantics = [#tpu.dimension_semantics<parallel>], iteration_bounds = array<i64: 1>, scalar_prefetch = 0 : i64, scratch_operands = 0 : i64, tpu.core_type = #tpu.core_type<tc>, window_params = [{transform_indices = @transform_0, window_bounds = array<i64: 8, 32>}, {pipeline_mode = #tpu.pipeline_mode<synchronous>, transform_indices = @transform_1, window_bounds = array<i64: 32, 128>}, {pipeline_mode = #tpu.pipeline_mode<synchronous>, transform_indices = @transform_2, window_bounds = array<i64: 1, 128>}, {transform_indices = @transform_3, window_bounds = array<i64: 8, 128>}]} {
    %c0 = arith.constant 0 : index
    %c0_0 = arith.constant 0 : index
    %0 = vector.load %arg1[%c0, %c0_0] : memref<8x32xf32, #tpu.memory_space<vmem>>, vector<8x32xf32>
    %c0_1 = arith.constant 0 : index
    %c0_2 = arith.constant 0 : index
    %1 = vector.load %arg2[%c0_1, %c0_2] : memref<32x128xf32, #tpu.memory_space<vmem>>, vector<32x128xf32>
    %cst = arith.constant dense<0.000000e+00> : vector<8x128xf32>
    %2 = tpu.matmul %0, %1, %cst {dimension_numbers = #tpu.dot_dimension_numbers<[1], [0], [0], [1], [0, 0, 1, 1], [], []>} : vector<8x32xf32>, vector<32x128xf32>, vector<8x128xf32> -> vector<8x128xf32>
    %c0_3 = arith.constant 0 : index
    %c0_4 = arith.constant 0 : index
    %3 = vector.load %arg3[%c0_3, %c0_4] : memref<1x128xf32, #tpu.memory_space<vmem>>, vector<1x128xf32>
    %4 = vector.broadcast %3 : vector<1x128xf32> to vector<8x128xf32>
    %5 = arith.addf %2, %4 : vector<8x128xf32>
    %c0_5 = arith.constant 0 : index
    %c0_6 = arith.constant 0 : index
    %6 = vector.load %arg4[%c0_5, %c0_6] : memref<8x128xf32, #tpu.memory_space<vmem>>, vector<8x128xf32>
    tpu.vector_store %arg4[%c0_5, %c0_6], %5 {strides = array<i32>} : memref<8x128xf32, #tpu.memory_space<vmem>>, vector<8x128xf32>,
    return
  }
  func.func @transform_0(%arg0: i32) -> (i32, i32) {
    %c0_i32 = arith.constant 0 : i32
    %c0_i32_0 = arith.constant 0 : i32
    return %arg0, %c0_i32 : i32, i32
  }
  func.func @transform_1(%arg0: i32) -> (i32, i32) {
    %c0_i32 = arith.constant 0 : i32
    %c0_i32_0 = arith.constant 0 : i32
    %c0_i32_1 = arith.constant 0 : i32
    return %c0_i32, %c0_i32_0 : i32, i32
  }
  func.func @transform_2(%arg0: i32) -> (i32, i32) {
    %c0_i32 = arith.constant 0 : i32
    %c0_i32_0 = arith.constant 0 : i32
    %c0_i32_1 = arith.constant 0 : i32
    return %c0_i32, %c0_i32_0 : i32, i32
  }
  func.func @transform_3(%arg0: i32) -> (i32, i32) {
    %c0_i32 = arith.constant 0 : i32
    %c0_i32_0 = arith.constant 0 : i32
    return %arg0, %c0_i32 : i32, i32
  }
}

</mosaic_0001>

<bundles_post_ra>
// kernel: pcbm_forward.1
= control target key start
LH: loop header
LB: loop body
LE: loop exit
PB: predicated region body
PF: predicated region fallthrough
CT: control target
= control target key end

     0   :  { %8 = vsyncpa [#allocation3], 0  ;;  %s274_s0 = inlined_call_operand.hbm [shape: f32[8,32], index: 0, kind: input, shape index: {}]   ;;  %s275_s1 = inlined_call_operand.hbm [shape: f32[32,128], index: 1, kind: input, shape index: {}]   ;;  %s276_s2 = inlined_call_operand.vmem [shape: f32[1,128], index: 2, kind: input, shape index: {}]   ;;  %s277_s3 = inlined_call_operand.hbm [shape: f32[8,128], index: 3, kind: output, shape index: {}]  }
   0x1   :  { %9 = vsyncpa [#allocation6], 0 }
   0x2   :  { %10 = vsyncpa [#allocation4], 0  ;;  %s235_s12 = smov [#allocation2]   ;;  %s236_s14 = smov [#allocation5]  }
   0x3   :  { %s17_s13 = sshll.u32 %s235_s12, 4  ;;  %s26_s15 = sshll.u32 %s236_s14, 4  ;;  %s18_s13 = int_to_ptr.vmem [resolvable:$true] %s17_s13  ;;  %s27_s15 = int_to_ptr.vmem [resolvable:$true] %s26_s15 }
   0x4   :  { %s177_s16 = scalar_lea.vmem %s18_s13, 128  ;;  %p182_p1 = scmp.lt.s32.totalorder %s18_s13, %s18_s13 }
   0x5   :  { %p178_p0 = scmp.ne.s32.totalorder %s18_s13, %s177_s16  ;;  %p183_p2 = scmp.lt.s32.totalorder %s177_s16, %s177_s16 }
   0x7   :  { %p184_p3 = por %p183_p2, %p182_p1 }
   0x9   :  { %p185_p4 = pnand %p184_p3, %p178_p0 }
   0xb   :  { %188 = shalt.err (!%p185_p4)
}
   0xc   :  { %20 = dma.hbm_to_vmem [thread:$0]  %s274_s0, 128, %s18_s13, [#allocation3]  }
   0xd   :  { %s197_s19 = scalar_lea.vmem %s27_s15, 512  ;;  %p202_p6 = scmp.lt.s32.totalorder %s27_s15, %s27_s15 }
   0xe   :  { %p198_p5 = scmp.ne.s32.totalorder %s27_s15, %s197_s19  ;;  %p203_p7 = scmp.lt.s32.totalorder %s197_s19, %s197_s19 }
  0x10   :  { %p204_p8 = por %p203_p7, %p202_p6 }
  0x12   :  { %p205_p9 = pnand %p204_p8, %p198_p5 }
  0x14   :  { %208 = shalt.err (!%p205_p9)
}
  0x15   :  { %s237_s20 = smov 128   ;;  %s238_s21 = smov 8  }
  0x16   :  { %32 = dma.hbm_to_vmem [thread:$0]  %s275_s1, 512, %s27_s15, [#allocation6], %s237_s20, %s237_s20, %s238_s21  }
  0x17   :  { %229 = dma.done.wait [#allocation3], 128  }
  0x18   :  { %230 = vsyncadd [#allocation3], 4294967168 }
  0x19   :  { %231 = dma.done.wait [#allocation6], 512  }
  0x1a   :  { %232 = vsyncadd [#allocation6], 4294966784  ;;  %v239_v0 = vmov 0.0   ;;  %vm240_vm0 = vmmov 0   ;;  %v45_v1 = vld [vmem:[#allocation5 + $0x18] sm:$0xff]  ;;  %v44_v2 = vld [vmem:[#allocation5 + $0x10] sm:$0xff] }
  0x1b   :  { %151 = vmatprep.subr.mxu0 %v239_v0  ;;  %159 = vmatprep.mubr.msk.f32.mxu0 %vm240_vm0, %v239_v0  ;;  %v43_v3 = vld [vmem:[#allocation5 + $0x8] sm:$0xff]  ;;  %v42_v4 = vld [vmem:[#allocation5] sm:$0xff]  ;;  %v41_v5 = vld [vmem:[#allocation2] sm:$0xff]  ;;  %vm53_vm1 = vcmask 261120   ;;  %s241_s24 = smov [#allocation7]  }
  0x1c   :  { %152 = vmatpush3.msra.mxu0 %v45_v1  ;;  %v144_v6 = vld [vmem:[%s276_s2] ss:$0 sm:$0xff]  ;;  %s134_s25 = sshll.u32 %s241_s24, 4  ;;  %s135_s25 = int_to_ptr.vmem [resolvable:$true] %s134_s25 }
  0x1d   :  { %153 = vmatprep.subr.mxu0 %v239_v0  ;;  %s209_s26 = scalar_lea.vmem %s135_s25, 128  ;;  %p214_p11 = scmp.lt.s32.totalorder %s135_s25, %s135_s25 }
  0x1e   :  { %154 = vmatpush3.msra.mxu0 %v44_v2  ;;  %p210_p10 = scmp.ne.s32.totalorder %s135_s25, %s209_s26  ;;  %p215_p12 = scmp.lt.s32.totalorder %s209_s26, %s209_s26 }
  0x1f   :  { %155 = vmatprep.subr.mxu0 %v239_v0 }
  0x20   :  { %156 = vmatpush3.msra.mxu0 %v43_v3  ;;  %p216_p13 = por %p215_p12, %p214_p11 }
  0x21   :  { %157 = vmatprep.subr.mxu0 %v239_v0 }
  0x22   :  { %158 = vmatpush3.msra.mxu0 %v42_v4  ;;  %p217_p0 = pnand %p216_p13, %p210_p10 }
  0x23   :  { %160 = vmatmul.mubr.msk.f32.vlgmr.msra.gmra.mxu0 %vm53_vm1, %v41_v5 }
  0xe3   :  { %v123_v7 = vpop.f32.mrf.mxu0 }
  0xe4   :  { %v124_v8 = vadd.f32 %v144_v6, %v123_v7 }
  0xe5   :  { %v161_v9 = vpop.f32.mrf.mxu0 }
  0xe6   :  { %127 = vst [vmem:[#allocation7] sm:$0xff] %v124_v8 }
  0xe7   :  { %220 = shalt.err (!%p217_p0)
}
  0xe8   :  { %137 = dma.vmem_to_hbm [thread:$0]  %s135_s25, 128, %s277_s3, [#allocation4]  }
  0xe9   :  { %233 = dma.done.wait [#allocation4], 128  }
  0xea   :  { %234 = vsyncadd [#allocation4], 4294967168 }
  0xeb   :  { %141 = vsyncpa [#allocation3], 1 }
  0xec   :  { %142 = vsyncpa [#allocation6], 1 }
  0xed   :  { %143 = vsyncpa [#allocation4], 1 }

</bundles_post_ra>
